<compile_context>
chip_gen: v5e
topology: v5e:2x2
jax: 0.10.0
libtpu: 0.0.40
codegen_flags: <defaults>
</compile_context>

<pallas_src>
import functools

import jax
import jax.numpy as jnp
from jax.experimental import pallas as pl
from jax.experimental.pallas import tpu as pltpu


def _s2d_kernel(x_ref, p_ref, o_ref, *, s, W, Ln, nW):
    """One (batch, channel-tile) slab -> all s*s output phases.

    x_ref: (R, s*W)      lanes l = i*W + w, w = wo*s + j, rows r = c_local*Ho + ho
    p_ref: (s*Ln, s*Ln)  one-hot chunk permutation, phase-major columns
    o_ref: (s*s, R, Wo)  o_ref[i*s + j, r, wo] = x_ref[r, i*W + wo*s + j]
    """
    sel = p_ref[...]                       # tiny, hoisted once; VMEM-resident
    for i in range(s):                     # static unroll: H-phase = lane offset i*W
        for k in range(nW):                # static unroll: 128-lane output chunks
            lo = i * W + k * s * Ln
            # per-chunk ref load (no full-slab temporary), bounded MXU K = s*Ln
            zc = x_ref[:, lo:lo + s * Ln].astype(sel.dtype)            # (R, s*Ln)
            y = jnp.dot(zc, sel, preferred_element_type=jnp.float32)   # (R, s*Ln)
            for j in range(s):             # phase-major columns -> aligned slices
                o_ref[i * s + j, :, k * Ln:(k + 1) * Ln] = (
                    y[:, j * Ln:(j + 1) * Ln].astype(o_ref.dtype))


def _vmem_capacity_bytes():
    try:
        return int(pltpu.get_tpu_info().vmem_capacity_bytes)
    except Exception:
        return 64 * 1024 * 1024            # v7x per-TensorCore VMEM (conservative)


def _pick_lane_chunk(Wo, s):
    """Output-lane chunk Ln: divides Wo, keeps the MXU K/N = s*Ln <= ~256."""
    ln_max = max(8, min(128, 256 // s))
    if Wo <= ln_max:
        return Wo
    best = max(d for d in range(1, ln_max + 1) if Wo % d == 0)
    return best if best >= 8 else Wo       # pathological Wo: one full-width chunk


def _pick_channel_tile(C, Ho, H, W, itemsize, slab_budget, pack, max_ct):
    """Largest channel tile Ct (divisor of C, <= max_ct) whose full-H slab fits."""
    divisors = [d for d in range(1, C + 1) if C % d == 0 and d <= max_ct] or [1]
    fits = [d for d in divisors if d * H * W * itemsize <= slab_budget]
    # prefer dtype-aware sublane packing, then 8-row tiles, then anything that fits
    for cand in ([d for d in fits if (d * Ho) % pack == 0],
                 [d for d in fits if (d * Ho) % 8 == 0],
                 fits):
        if cand:
            return max(cand)
    return 1            # nothing fits the budget: stream one channel at a time


def space_to_depth(x, block_size):
    B, C, H, W = x.shape
    s = int(block_size)
    if s == 1:
        return x
    assert H % s == 0 and W % s == 0, "spatial dims must be divisible by block_size"
    Ho, Wo = H // s, W // s
    dtype = x.dtype
    itemsize = jnp.dtype(dtype).itemsize

    # ---- chunked one-hot lane-permutation selector (phase-major columns) ----
    Ln = _pick_lane_chunk(Wo, s)
    nW = Wo // Ln
    if jnp.issubdtype(dtype, jnp.floating):
        sel_dtype = dtype
    else:
        # TODO(synk): integer / fp8 inputs go through an exact-for-small-values
        # f32 MXU cast path; a non-MXU lane-shuffle path is needed for full int32
        # range (v7x MXU has no integer mode).
        sel_dtype = jnp.float32
    col = jnp.arange(s * Ln)[None, :]
    row = jnp.arange(s * Ln)[:, None]
    P = (row == (col % Ln) * s + (col // Ln)).astype(sel_dtype)      # (s*Ln, s*Ln)

    # ---- generation-aware VMEM budget & channel tiling -----------------------
    cap = _vmem_capacity_bytes()                     # 64 MiB v7x, 128 MiB v5e/v6e
    usable = int(cap * 0.85)                         # leave compiler headroom
    wo_pad = -(-Wo // 128) * 128
    padf = wo_pad / Wo                               # output lane-padding factor
    #   2x input (double buffer) + 2x lane-padded output (double buffer)
    # + ~2x slab for in-kernel temporaries (chunk loads, f32 matmul results)
    mult = 2.0 + 2.0 * padf + 2.0
    slab_budget = int(usable / mult)
    pack = max(8, 32 // itemsize)                    # packed sublanes for this dtype
    # When B == 1, cap the tile so the grid has >= 2 steps and both v7x
    # TensorCores get work (one extra, cheap step on single-TC v5e/v6e).
    max_ct = C if (B > 1 or C == 1) else max(1, C // 2)
    # TODO(synk): for B == 1 and C == 1 a third Ho-block grid axis would be
    # needed for dual-TC occupancy on v7x.
    Ct = _pick_channel_tile(C, Ho, H, W, itemsize, slab_budget, pack, max_ct)
    n_ct = C // Ct
    R = Ct * Ho

    # ---- free views: rows = (c, ho), lanes = (i, w) ---------------------------
    x3 = x.reshape(B, C * Ho, s * W)

    kernel = functools.partial(_s2d_kernel, s=s, W=W, Ln=Ln, nW=nW)
    flops = 2 * B * C * H * W * s * Ln               # bounded MXU work per element
    bytes_accessed = 2 * B * C * H * W * itemsize + (s * Ln) * (s * Ln) * itemsize

    out4 = pl.pallas_call(
        kernel,
        out_shape=jax.ShapeDtypeStruct((B, s * s, C * Ho, Wo), dtype),
        grid=(B, n_ct),
        in_specs=[
            # one contiguous channel-tile slab per step; read from HBM exactly once
            pl.BlockSpec((None, R, s * W), lambda b, ct: (b, ct, 0)),
            # selector: constant block index -> loaded once, stays VMEM-resident
            pl.BlockSpec((s * Ln, s * Ln), lambda b, ct: (0, 0)),
        ],
        # write-once output block, phases block-major; unmasked stores when Wo%128==0
        out_specs=pl.BlockSpec((None, s * s, R, Wo), lambda b, ct: (b, 0, ct, 0)),
        compiler_params=pltpu.CompilerParams(
            dimension_semantics=("parallel", "parallel"),
            vmem_limit_bytes=usable),
        cost_estimate=pl.CostEstimate(flops=flops, transcendentals=0,
                                      bytes_accessed=bytes_accessed),
    )(x3, P)

    # free view to the final NCHW output with block-major channels
    return out4.reshape(B, C * s * s, Ho, Wo)


def _reference(x, s):
    # Pure-JAX reference of pixel_unshuffle + channel_interleave2d(reverse=False)
    B, C, H, W = x.shape
    xr = x.reshape(B, C, H // s, s, W // s, s)
    xt = jnp.transpose(xr, (0, 3, 5, 1, 2, 4))     # (B, s, s, C, Ho, Wo)
    return xt.reshape(B, C * s * s, H // s, W // s)


if __name__ == "__main__":
    block_size = 2
    B, C, H, W = 2, 4, 16, 16
    key = jax.random.PRNGKey(0)
    x = jax.random.normal(key, (B, C, H, W), dtype=jnp.float32)

    out = jax.block_until_ready(space_to_depth(x, block_size))

    ref = _reference(x, block_size)
    assert out.shape == ref.shape, (out.shape, ref.shape)
    assert bool(jnp.allclose(out, ref, atol=1e-6, rtol=1e-6)), "mismatch vs reference"
    print("KERNEL_OK")
</pallas_src>

<mosaic_0001>
module attributes {stable_mosaic.version = 11 : i64} {
  func.func @_s2d_kernel(%arg0: i32, %arg1: i32, %arg2: memref<1x32x32xf32, #tpu.memory_space<vmem>>, %arg3: memref<16x16xf32, #tpu.memory_space<vmem>>, %arg4: memref<1x4x32x8xf32, #tpu.memory_space<vmem>>) attributes {dimension_semantics = [#tpu.dimension_semantics<parallel>, #tpu.dimension_semantics<parallel>], iteration_bounds = array<i64: 2, 1>, scalar_prefetch = 0 : i64, scratch_operands = 0 : i64, tpu.core_type = #tpu.core_type<tc>, window_params = [{transform_indices = @transform_0, window_bounds = array<i64: 1, 32, 32>}, {pipeline_mode = #tpu.pipeline_mode<synchronous>, transform_indices = @transform_1, window_bounds = array<i64: 16, 16>}, {transform_indices = @transform_2, window_bounds = array<i64: 1, 4, 32, 8>}]} {
    %c0 = arith.constant 0 : index
    %c0_0 = arith.constant 0 : index
    %0 = vector.load %arg3[%c0, %c0_0] : memref<16x16xf32, #tpu.memory_space<vmem>>, vector<16x16xf32>
    %c0_1 = arith.constant 0 : index
    %c0_2 = arith.constant 0 : index
    %c0_3 = arith.constant 0 : index
    %1 = vector.load %arg2[%c0_1, %c0_2, %c0_3] : memref<1x32x32xf32, #tpu.memory_space<vmem>>, vector<1x32x16xf32>
    %2 = vector.shape_cast %1 : vector<1x32x16xf32> to vector<32x16xf32>
    %cst = arith.constant dense<0.000000e+00> : vector<32x16xf32>
    %3 = tpu.matmul %2, %0, %cst {dimension_numbers = #tpu.dot_dimension_numbers<[1], [0], [0], [1], [0, 0, 1, 1], [], []>} : vector<32x16xf32>, vector<16x16xf32>, vector<32x16xf32> -> vector<32x16xf32>
    %4 = vector.extract_strided_slice %3 {offsets = [0, 0], sizes = [32, 8], strides = [1, 1]} : vector<32x16xf32> to vector<32x8xf32>
    %c0_4 = arith.constant 0 : index
    %c0_5 = arith.constant 0 : index
    %c0_6 = arith.constant 0 : index
    %c0_7 = arith.constant 0 : index
    %5 = vector.load %arg4[%c0_4, %c0_5, %c0_6, %c0_7] : memref<1x4x32x8xf32, #tpu.memory_space<vmem>>, vector<1x1x32x8xf32>
    %6 = vector.shape_cast %5 : vector<1x1x32x8xf32> to vector<32x8xf32>
    %7 = vector.shape_cast %4 : vector<32x8xf32> to vector<1x1x32x8xf32>
    tpu.vector_store %arg4[%c0_4, %c0_5, %c0_6, %c0_7], %7 {strides = array<i32>} : memref<1x4x32x8xf32, #tpu.memory_space<vmem>>, vector<1x1x32x8xf32>,
    %8 = vector.extract_strided_slice %3 {offsets = [0, 8], sizes = [32, 8], strides = [1, 1]} : vector<32x16xf32> to vector<32x8xf32>
    %c0_8 = arith.constant 0 : index
    %c1 = arith.constant 1 : index
    %c0_9 = arith.constant 0 : index
    %c0_10 = arith.constant 0 : index
    %9 = vector.load %arg4[%c0_8, %c1, %c0_9, %c0_10] : memref<1x4x32x8xf32, #tpu.memory_space<vmem>>, vector<1x1x32x8xf32>
    %10 = vector.shape_cast %9 : vector<1x1x32x8xf32> to vector<32x8xf32>
    %11 = vector.shape_cast %8 : vector<32x8xf32> to vector<1x1x32x8xf32>
    tpu.vector_store %arg4[%c0_8, %c1, %c0_9, %c0_10], %11 {strides = array<i32>} : memref<1x4x32x8xf32, #tpu.memory_space<vmem>>, vector<1x1x32x8xf32>,
    %c0_11 = arith.constant 0 : index
    %c0_12 = arith.constant 0 : index
    %c16 = arith.constant 16 : index
    %12 = vector.load %arg2[%c0_11, %c0_12, %c16] : memref<1x32x32xf32, #tpu.memory_space<vmem>>, vector<1x32x16xf32>
    %13 = vector.shape_cast %12 : vector<1x32x16xf32> to vector<32x16xf32>
    %cst_13 = arith.constant dense<0.000000e+00> : vector<32x16xf32>
    %14 = tpu.matmul %13, %0, %cst_13 {dimension_numbers = #tpu.dot_dimension_numbers<[1], [0], [0], [1], [0, 0, 1, 1], [], []>} : vector<32x16xf32>, vector<16x16xf32>, vector<32x16xf32> -> vector<32x16xf32>
    %15 = vector.extract_strided_slice %14 {offsets = [0, 0], sizes = [32, 8], strides = [1, 1]} : vector<32x16xf32> to vector<32x8xf32>
    %c0_14 = arith.constant 0 : index
    %c2 = arith.constant 2 : index
    %c0_15 = arith.constant 0 : index
    %c0_16 = arith.constant 0 : index
    %16 = vector.load %arg4[%c0_14, %c2, %c0_15, %c0_16] : memref<1x4x32x8xf32, #tpu.memory_space<vmem>>, vector<1x1x32x8xf32>
    %17 = vector.shape_cast %16 : vector<1x1x32x8xf32> to vector<32x8xf32>
    %18 = vector.shape_cast %15 : vector<32x8xf32> to vector<1x1x32x8xf32>
    tpu.vector_store %arg4[%c0_14, %c2, %c0_15, %c0_16], %18 {strides = array<i32>} : memref<1x4x32x8xf32, #tpu.memory_space<vmem>>, vector<1x1x32x8xf32>,
    %19 = vector.extract_strided_slice %14 {offsets = [0, 8], sizes = [32, 8], strides = [1, 1]} : vector<32x16xf32> to vector<32x8xf32>
    %c0_17 = arith.constant 0 : index
    %c3 = arith.constant 3 : index
    %c0_18 = arith.constant 0 : index
    %c0_19 = arith.constant 0 : index
    %20 = vector.load %arg4[%c0_17, %c3, %c0_18, %c0_19] : memref<1x4x32x8xf32, #tpu.memory_space<vmem>>, vector<1x1x32x8xf32>
    %21 = vector.shape_cast %20 : vector<1x1x32x8xf32> to vector<32x8xf32>
    %22 = vector.shape_cast %19 : vector<32x8xf32> to vector<1x1x32x8xf32>
    tpu.vector_store %arg4[%c0_17, %c3, %c0_18, %c0_19], %22 {strides = array<i32>} : memref<1x4x32x8xf32, #tpu.memory_space<vmem>>, vector<1x1x32x8xf32>,
    return
  }
  func.func @transform_0(%arg0: i32, %arg1: i32) -> (i32, i32, i32) {
    %c0_i32 = arith.constant 0 : i32
    %c0_i32_0 = arith.constant 0 : i32
    return %arg0, %arg1, %c0_i32 : i32, i32, i32
  }
  func.func @transform_1(%arg0: i32, %arg1: i32) -> (i32, i32) {
    %c0_i32 = arith.constant 0 : i32
    %c0_i32_0 = arith.constant 0 : i32
    %c0_i32_1 = arith.constant 0 : i32
    return %c0_i32, %c0_i32_0 : i32, i32
  }
  func.func @transform_2(%arg0: i32, %arg1: i32) -> (i32, i32, i32, i32) {
    %c0_i32 = arith.constant 0 : i32
    %c0_i32_0 = arith.constant 0 : i32
    %c0_i32_1 = arith.constant 0 : i32
    return %arg0, %c0_i32, %arg1, %c0_i32_0 : i32, i32, i32, i32
  }
}

</mosaic_0001>

<bundles_post_ra>
// kernel: tpu_custom_call.1
= control target key start
LH: loop header
LB: loop body
LE: loop exit
PB: predicated region body
PF: predicated region fallthrough
CT: control target
= control target key end

     0   :  { %7 = vsyncpa [#allocation3], 0  ;;  %s869_s0 = inlined_call_operand.hbm [shape: f32[2,32,32], index: 0, kind: input, shape index: {}]   ;;  %s870_s1 = inlined_call_operand.hbm [shape: f32[16,16], index: 1, kind: input, shape index: {}]   ;;  %s871_s2 = inlined_call_operand.vmem [shape: f32[2,4,32,8], index: 2, kind: output, shape index: {}]  }
   0x1   :  { %9 = vsyncpa [#allocation3 + $0x1], 0 }
   0x2   :  { %10 = vsyncpa [#allocation5], 0  ;;  %s716_s9 = smov 0   ;;  %s718_s10 = smov 0  }
   0x3   :  { %s720_s11 = smov 0   ;;  %s722_s12 = smov 0  }
   0x4   :  { %s724_s13 = smov 0   ;;  %s726_s14 = smov 0  }
   0x5 LB: > { %s469_s15 = sadd.s32 4294967295, %s694_s14   ;;  %p50_p0 = scmp.ne.s32.totalorder %s678_s10, %s674_s9  ;;  %s694_s14 = sphi %s726_s14, %s16_s14   ;;  %s690_s13 = sphi %s724_s13, %s880_s13   ;;  %s686_s12 = sphi %s722_s12, %s879_s12   ;;  %s682_s11 = sphi %s720_s11, %s878_s11   ;;  %s678_s10 = sphi %s718_s10, %s877_s10   ;;  %s674_s9 = sphi %s716_s9, %s876_s9  }
   0x6   : > { %p746_p1 = scmp.eq.s32.totalorder %s469_s15, 0  ;;  %p471_p2 = scmp.ge.s32.totalorder %s694_s14, 1 }
   0x7   : > { %p110_p3 = scmp.lt.s32.totalorder %s694_s14, 3  ;;  %s121_s20 = sshll.u32 %s870_s1, 4  ;;  %s122_s20 = int_to_ptr.hbm [resolvable:$true] %s121_s20 }
   0x8   : > { %p754_p4 = por %p746_p1, %p50_p0  ;;  %s696_s22 = smov [#allocation4]  }
   0x9   : > { %p761_p5 = pnand %p471_p2, %p110_p3  ;;  %s123_s23 = sshll.u32 %s696_s22, 4  ;;  %s124_s23 = int_to_ptr.vmem [resolvable:$true] %s123_s23 }
   0xa   : > { %s697_s24 = smov 128   ;;  %s698_s25 = smov 8  }
   0xb   : > { %p516_p6 = pneg %p761_p5  ;;  %s28_s26 = sadd.s32 1, %s690_s13 }
   0xc   : > { %p30_p8 = scmp.ge.s32.totalorder %s28_s26, 2  ;;  %p44_p9 = scmp.ne.s32.totalorder %s682_s11, %s678_s10 }
   0xd   : > { %p517_p7 = pnand %p516_p6, %p746_p1  ;;  %p45_p10 = scmp.eq.s32.totalorder %s694_s14, 0 }
   0xe   : > { %s882_s26 = smov (%p30_p8, %s28_s26), 0  ;;  %s37_s27 = sadd.s32 1, %s682_s11 }
   0xf   : > { %519 = dma.hbm_to_vmem [thread:$0]  (!%p517_p7), %s122_s20, 256, %s124_s23, [#allocation5], %s697_s24, %s697_s24, %s698_s25  }
  0x10   : > { %p776_p11 = por %p45_p10, %p44_p9  ;;  %s32_s29 = ssub.s32 %s690_s13, %s882_s26 }
  0x11   : > { %s137_s30 = sand.u32 1, %s682_s11   ;;  %p35_p12 = scmp.eq.s32.totalorder %s32_s29, 0 }
  0x12   : > { %p525_p13 = scmp.lt.s32.totalorder %s694_s14, 2  ;;  %s474_s3 = sshll.u32 %s137_s30, 5 }
  0x13   : > { %s504_s4 = sshll.u32 %s690_s13, 5  ;;  %s141_s15 = scalar_lea.vmem [#allocation2], %s474_s3 }
  0x14   : > { %s786_s5 = scalar_select %p35_p12, %s682_s11, %s37_s27  }
  0x15   : > { %s148_s8 = scalar_lea.hbm %s869_s0, %s504_s4  ;;  %s151_s18 = sshll.u32 %s141_s15, 4  ;;  %s152_s18 = int_to_ptr.vmem [resolvable:$true] %s151_s18 }
  0x16   : > { %s149_s9 = sshll.u32 %s148_s8, 4  ;;  %p521_p0 = pnand %p525_p13, %p776_p11  ;;  %s150_s9 = int_to_ptr.hbm [resolvable:$true] %s149_s9 }
  0x17   : > { %s138_s19 = scalar_lea.sflag [#allocation3], %s137_s30  ;;  %163 = sbr.rel (%p761_p5) target bundleno = 405 (0x195), region = 28 }
  0x18   : > { %523 = dma.hbm_to_vmem [thread:$0]  (!%p521_p0), %s150_s9, 512, %s152_s18, %s138_s19, %s697_s24, %s697_s24, %s698_s25  }
  0x19   : > { %s165_s20 = sand.u32 (!%p761_p5), 1, %s678_s10  }
  0x1a   : > { %s478_s22 = sshll.u32 (!%p761_p5), %s165_s20, 5  ;;  %s166_s23 = scalar_lea.sflag (!%p761_p5), [#allocation3], %s165_s20 }
  0x1b   : > { %s169_s27 = scalar_lea.vmem (!%p761_p5), [#allocation2], %s478_s22 }
  0x1c   : > { %665 = dma.done.wait (%p754_p4), %s166_s23, 512  }
  0x1d   : > { %667 = vsyncadd (%p754_p4), %s166_s23, 4294966784 }
  0x1e   : > { %669 = dma.done.wait (%p746_p1), [#allocation5], 256  }
  0x1f   : > { %671 = vsyncadd (%p746_p1), [#allocation5], 4294967040  ;;  %v287_v0 = vld [vmem:[%s169_s27 + $0x10] sm:$0xff]  ;;  %v288_v1 = vld [vmem:[%s169_s27 + $0x18] sm:$0xff]  ;;  %s699_s21 = smov 112   ;;  %vm217_vm0 = vcmask 130048  }
  0x20   : > { %297 = vrot.lane.b32.xlu0 %v287_v0, %s699_s21  ;;  %299 = vrot.lane.b32.xlu1 %v288_v1, %s699_s21  ;;  %v212_v2 = vld [vmem:[#allocation4 + $0x8] sm:$0xff]  ;;  %v211_v3 = vld [vmem:[#allocation4] sm:$0xff]  ;;  %p202_p1 = scmp.lt.s32.totalorder %s686_s12, 1  ;;  %vm259_vm1 = vcmask 64512   ;;  %s700_s28 = smov 120  }
  0x21   : > { %506 = vmatpush.msra.mxu2 %v212_v2  ;;  %244 = vmatpush.msra.mxu0 %v212_v2  ;;  %v285_v4 = vld [vmem:[%s169_s27] sm:$0xff]  ;;  %v286_v5 = vld [vmem:[%s169_s27 + $0x8] sm:$0xff] }
  0x22   : > { %508 = vmatpush.msra.mxu3 %v212_v2  ;;  %323 = vmatpush.msra.mxu1 %v212_v2  ;;  %s884_s12 = smov (!%p202_p1, %s686_s12), 1 }
  0x23   : > { %507 = vmatpush.msra.mxu2 %v211_v3  ;;  %245 = vmatpush.msra.mxu0 %v211_v3  ;;  %s505_s16 = sshll.u32 %s884_s12, 7 }
  0x24   : > { %484 = vmatmul.msk.f32.vlgmr.msra.gmra.mxu2 %vm217_vm0, %v287_v0  ;;  %482 = vmatmul.msk.f32.vlgmr.msra.gmra.mxu0 %vm217_vm0, %v285_v4  ;;  %s816_s25 = scalar_lea.vmem %s871_s2, %s505_s16 }
  0x25   : > { %509 = vmatpush.msra.mxu3 %v211_v3  ;;  %324 = vmatpush.msra.mxu1 %v211_v3 }
  0x28   : > { %293 = vrot.lane.b32.xlu0 %v285_v4, %s699_s21  ;;  %295 = vrot.lane.b32.xlu1 %v286_v5, %s699_s21 }
  0x2c   : > { %485 = vmatmul.msk.f32.gmra.mxu2 %vm217_vm0, %v288_v1  ;;  %483 = vmatmul.msk.f32.gmra.mxu0 %vm217_vm0, %v286_v5 }
  0x92   : > { %v298_v6 = vpop.permute.xlu0 %297  ;;  %v300_v7 = vpop.permute.xlu1 %299 }
  0x93   : > { %492 = vmatmul.msk.f32.vlgmr.msra.gmra.mxu3 %vm217_vm0, %v298_v6 }
  0x9a   : > { %v294_v8 = vpop.permute.xlu0 %293  ;;  %v296_v9 = vpop.permute.xlu1 %295 }
  0x9b   : > { %490 = vmatmul.msk.f32.vlgmr.msra.gmra.mxu1 %vm217_vm0, %v294_v8  ;;  %493 = vmatmul.msk.f32.gmra.mxu3 %vm217_vm0, %v300_v7 }
  0xa1   : > { %v247_v10 = vpop.f32.mrf.mxu0 }
  0xa2   : > { %260 = vst.msk [vmem:[%s816_s25] sm:$0xff] %vm259_vm1, %v247_v10  ;;  %268 = vrot.lane.b32.xlu2 %v247_v10, %s700_s28 }
  0xa3   : > { %491 = vmatmul.msk.f32.gmra.mxu1 %vm217_vm0, %v296_v9 }
  0xa7   : > { %v253_v11 = vpop.f32.mrf.mxu2 }
  0xa8   : > { %262 = vst.msk [vmem:[%s816_s25 + $0x10] sm:$0xff] %vm259_vm1, %v253_v11  ;;  %272 = vrot.lane.b32.xlu0 %v253_v11, %s700_s28 }
  0xa9   : > { %v250_v12 = vpop.f32.mrf.mxu0 }
  0xaa   : > { %261 = vst.msk [vmem:[%s816_s25 + $0x8] sm:$0xff] %vm259_vm1, %v250_v12  ;;  %270 = vrot.lane.b32.xlu2 %v250_v12, %s700_s28 }
  0xaf   : > { %v256_v13 = vpop.f32.mrf.mxu2 }
  0xb0   : > { %263 = vst.msk [vmem:[%s816_s25 + $0x18] sm:$0xff] %vm259_vm1, %v256_v13  ;;  %274 = vrot.lane.b32.xlu1 %v256_v13, %s700_s28 }
  0xfc   : > { %v269_v14 = vpop.permute.xlu2 %268 }
  0xfd   : > { %486 = vst.msk [vmem:[%s816_s25 + $0x20] sm:$0xff] %vm259_vm1, %v269_v14 }
 0x104   : > { %v271_v15 = vpop.permute.xlu2 %270 }
 0x105   : > { %487 = vst.msk [vmem:[%s816_s25 + $0x28] sm:$0xff] %vm259_vm1, %v271_v15 }
 0x116   : > { %v332_v16 = vpop.f32.mrf.mxu3 }
 0x117   : > { %496 = vst.msk [vmem:[%s816_s25 + $0x50] sm:$0xff] %vm259_vm1, %v332_v16  ;;  %351 = vrot.lane.b32.xlu1 %v332_v16, %s700_s28 }
 0x118   : > { %v326_v17 = vpop.f32.mrf.mxu1 }
 0x119   : > { %494 = vst.msk [vmem:[%s816_s25 + $0x40] sm:$0xff] %vm259_vm1, %v326_v17  ;;  %347 = vrot.lane.b32.xlu2 %v326_v17, %s700_s28 }
 0x11a   : > { %v273_v21 = vpop.permute.xlu0 %272 }
 0x11b   : > { %488 = vst.msk [vmem:[%s816_s25 + $0x30] sm:$0xff] %vm259_vm1, %v273_v21 }
 0x11e   : > { %v335_v18 = vpop.f32.mrf.mxu3 }
 0x11f   : > { %497 = vst.msk [vmem:[%s816_s25 + $0x58] sm:$0xff] %vm259_vm1, %v335_v18 }
 0x120   : > { %v329_v19 = vpop.f32.mrf.mxu1 }
 0x121   : > { %495 = vst.msk [vmem:[%s816_s25 + $0x48] sm:$0xff] %vm259_vm1, %v329_v19  ;;  %349 = vrot.lane.b32.xlu0 %v329_v19, %s700_s28  ;;  %353 = vrot.lane.b32.xlu2 %v335_v18, %s700_s28 }
 0x122   : > { %v275_v20 = vpop.permute.xlu1 %274 }
 0x123   : > { %489 = vst.msk [vmem:[%s816_s25 + $0x38] sm:$0xff] %vm259_vm1, %v275_v20 }
 0x173   : > { %v348_v22 = vpop.permute.xlu2 %347 }
 0x174   : > { %498 = vst.msk [vmem:[%s816_s25 + $0x60] sm:$0xff] %vm259_vm1, %v348_v22 }
 0x17b   : > { %v354_v23 = vpop.permute.xlu2 %353 }
 0x17c   : > { %501 = vst.msk [vmem:[%s816_s25 + $0x78] sm:$0xff] %vm259_vm1, %v354_v23 }
 0x189   : > { %v352_v24 = vpop.permute.xlu1 %351 }
 0x18a   : > { %500 = vst.msk [vmem:[%s816_s25 + $0x70] sm:$0xff] %vm259_vm1, %v352_v24 }
 0x193   : > { %v350_v25 = vpop.permute.xlu0 %349 }
 0x194   : > { %499 = vst.msk [vmem:[%s816_s25 + $0x68] sm:$0xff] %vm259_vm1, %v350_v25 }
 0x195 PF: > { %s16_s14 = sadd.s32 1, %s694_s14   ;;  %s876_s9 = smov %s678_s10 }
 0x196   : > { %p13_p2 = scmp.ge.s32.totalorder %s16_s14, 4   ;;  %s877_s10 = smov %s682_s11 }
 0x197   : > { %s878_s11 = smov %s786_s5  ;;  %s879_s12 = smov %s690_s13 }
 0x198   : > { %s880_s13 = smov %s882_s26  ;;  %15 = sbr.rel (!%p13_p2) target bundleno = 5 (0x5), region = 75 }
 0x19d   :  { %394 = vsyncpa [#allocation3], 1 }
 0x19e   :  { %396 = vsyncpa [#allocation3 + $0x1], 1 }
 0x19f   :  { %397 = vsyncpa [#allocation5], 1 }

</bundles_post_ra>
